<compile_context>
chip_gen: v5e
topology: v5e:2x2
jax: 0.10.0
libtpu: 0.0.40
codegen_flags: <defaults>
</compile_context>

<pallas_src>
import jax
import jax.numpy as jnp
from jax import lax
from jax.experimental import pallas as pl
from jax.experimental.pallas import tpu as pltpu

EPS = 1e-5  # nn.InstanceNorm1d default eps


# --------------------------------------------------------------------------- kernels
def _packed_kernel(x_ref, idx_ref, avg_ref, tbl_ref, o_ref):
    """Lane-dense path: each 128-lane row of x_ref holds P = 128 // F original rows."""
    W = x_ref.shape[1]                       # 128
    P = idx_ref.shape[1]                     # rows packed per 128-lane row
    has_beta = tbl_ref.shape[1] == 2 * W

    xp = x_ref[...].astype(jnp.float32)      # (tb, 128)
    avg = avg_ref[...]                       # (128, 128) block-diagonal, entries 0 or 1/F

    # Per-segment instance-norm statistics on the (otherwise idle) MXU.
    # Centered form keeps PyTorch's numerics.
    mean = jnp.dot(xp, avg, preferred_element_type=jnp.float32)
    xc = xp - mean
    var = jnp.dot(xc * xc, avg, preferred_element_type=jnp.float32)
    h = xc * lax.rsqrt(var + EPS)

    # One-hot over P*L_pad columns (P disjoint hits per packed row), then a single
    # fused gamma[/beta] gather matmul against the block-diagonal table.
    idx = idx_ref[...]                       # (tb, P) int32, values in [0, P*L_pad)
    KL = tbl_ref.shape[0]
    iota = lax.broadcasted_iota(jnp.int32, (idx.shape[0], KL), 1)
    hit = idx[:, 0:1] == iota
    for p in range(1, P):                    # static unroll, P <= 64
        hit = hit | (idx[:, p:p + 1] == iota)
    onehot = hit.astype(jnp.float32)
    gb = jnp.dot(onehot, tbl_ref[...], preferred_element_type=jnp.float32)

    out = gb[:, :W] * h                      # lane slices at 0/128 -> aligned, unmasked
    if has_beta:
        out = out + gb[:, W:]
    o_ref[...] = out.astype(o_ref.dtype)


def _plain_kernel(x_ref, idx_ref, *refs):
    """Fallback path (F % 128 == 0 or awkward F): exact mean/var over the last axis."""
    o_ref = refs[-1]
    gw_ref = refs[0]
    bw_ref = refs[1] if len(refs) == 3 else None

    x = x_ref[...].astype(jnp.float32)
    mean = jnp.mean(x, axis=-1, keepdims=True)
    xc = x - mean
    var = jnp.mean(xc * xc, axis=-1, keepdims=True)
    h = xc * lax.rsqrt(var + EPS)

    l_pad = gw_ref.shape[0]
    iota = lax.broadcasted_iota(jnp.int32, (x_ref.shape[0], l_pad), 1)
    onehot = (idx_ref[...] == iota).astype(jnp.float32)          # (tb, 1) == (tb, L_pad)
    gamma = jnp.dot(onehot, gw_ref[...], preferred_element_type=jnp.float32)
    out = gamma * h
    if bw_ref is not None:
        beta = jnp.dot(onehot, bw_ref[...], preferred_element_type=jnp.float32)
        out = out + beta
    o_ref[...] = out.astype(o_ref.dtype)


# ------------------------------------------------------------------------- tiling util
def _vmem_caps():
    """(streamed-buffer budget, vmem_limit_bytes) - conservative across v5e/v6e/v7x."""
    phys = 64 * 1024 * 1024                  # v7x per-TensorCore physical (the smallest)
    try:
        info = pltpu.get_tpu_info()
        phys = int(getattr(info, "vmem_capacity_bytes", phys) or phys)
    except Exception:
        pass
    stream_budget = min(20 * 1024 * 1024, phys // 3)
    vmem_limit = min(phys // 2, stream_budget + 16 * 1024 * 1024)
    return stream_budget, int(vmem_limit)


def _vmem_row_bytes(n_cols, itemsize):
    """Per-row VMEM footprint of a streamed 2-D block, including (8,128) lane padding."""
    return (-(-n_cols // 128) * 128) * max(int(itemsize), 1)


def _pick_block_rows(n_rows, per_row_stream_bytes, budget_bytes):
    """Largest multiple-of-8 row tile whose double-buffered streamed footprint fits the
    byte budget, capped so the grid has >= 2 steps once there is enough work to split
    (double-buffering overlap + v7x's two TensorCores via 'parallel' semantics)."""
    tb = (budget_bytes // max(per_row_stream_bytes, 1)) // 8 * 8
    tb = max(tb, 8)
    if n_rows >= 16:
        tb = min(tb, max(8, (-(-n_rows // 2)) // 8 * 8))
    if tb >= n_rows:
        return n_rows                        # single full-extent block is always legal
    return tb


# ------------------------------------------------------------------------ entry points
def _packed_call(x, y, gamma_w, beta_w):
    B, F = x.shape
    L = gamma_w.shape[0]
    P = 128 // F
    W = P * F                                # == 128
    L_pad = -(-L // 8) * 8
    KL = P * L_pad
    bias = beta_w is not None

    # Pack P consecutive rows per 128-lane row (pad the batch if needed; padded rows
    # are computed but discarded at the end).
    B_pad = -(-B // P) * P
    if B_pad != B:
        x = jnp.pad(x, ((0, B_pad - B), (0, 0)))
        y = jnp.pad(y, (0, B_pad - B))
    rows = B_pad // P
    xp = x.reshape(rows, W)                  # free: contiguous reshape

    # Per original row: one-hot column = segment offset + class id.
    seg = (jnp.arange(B_pad, dtype=jnp.int32) % P) * L_pad
    idx = (y.astype(jnp.int32) + seg).reshape(rows, P)

    # (128, 128) block-diagonal averaging matrix (entries 0 or 1/F).
    lane = jnp.arange(W, dtype=jnp.int32)
    avg = ((lane[:, None] // F) == (lane[None, :] // F)).astype(jnp.float32) * (1.0 / F)

    # Block-diagonal gather table; gamma and beta fused side by side (single matmul).
    eye_p = jnp.eye(P, dtype=jnp.float32)

    def blockdiag(w):                        # (L, F) -> (KL, 128)
        w_pad = jnp.pad(w.astype(jnp.float32), ((0, L_pad - L), (0, 0)))
        return jnp.einsum("pq,lf->plqf", eye_p, w_pad).reshape(KL, W)

    tbl = blockdiag(gamma_w)
    if bias:
        tbl = jnp.concatenate([tbl, blockdiag(beta_w)], axis=1)   # (KL, 256)

    stream_budget, vmem_limit = _vmem_caps()
    per_row = 2 * (2 * _vmem_row_bytes(W, x.dtype.itemsize)       # x + out tiles
                   + _vmem_row_bytes(P, 4))                        # label-index tile
    tb = _pick_block_rows(rows, per_row, stream_budget)
    grid = (pl.cdiv(rows, tb),)

    cost = pl.CostEstimate(
        flops=int(rows) * (2 * 2 * W * W + 2 * KL * int(tbl.shape[1]) + 8 * W),
        transcendentals=int(rows) * W,
        bytes_accessed=int(2 * rows * W * x.dtype.itemsize
                           + idx.size * 4 + avg.size * 4 + tbl.size * 4),
    )

    out = pl.pallas_call(
        _packed_kernel,
        out_shape=jax.ShapeDtypeStruct((rows, W), x.dtype),
        grid_spec=pltpu.PrefetchScalarGridSpec(
            num_scalar_prefetch=0,
            grid=grid,
            in_specs=[
                pl.BlockSpec((tb, W), lambda i: (i, 0)),          # x (streamed)
                pl.BlockSpec((tb, P), lambda i: (i, 0)),          # label indices
                pl.BlockSpec((W, W), lambda i: (0, 0)),           # avg  (VMEM-resident)
                pl.BlockSpec(tuple(tbl.shape), lambda i: (0, 0)), # table (VMEM-resident)
            ],
            out_specs=pl.BlockSpec((tb, W), lambda i: (i, 0)),
        ),
        compiler_params=pltpu.CompilerParams(
            dimension_semantics=("parallel",), vmem_limit_bytes=vmem_limit),
        cost_estimate=cost,
    )(xp, idx, avg, tbl)

    return out.reshape(B_pad, F)[:B]


def _plain_call(x, y, gamma_w, beta_w):
    B, F = x.shape
    L = gamma_w.shape[0]
    L_pad = -(-L // 8) * 8
    bias = beta_w is not None

    idx = y.astype(jnp.int32).reshape(B, 1)
    tables = [jnp.pad(gamma_w.astype(jnp.float32), ((0, L_pad - L), (0, 0)))]
    if bias:
        tables.append(jnp.pad(beta_w.astype(jnp.float32), ((0, L_pad - L), (0, 0))))

    stream_budget, vmem_limit = _vmem_caps()
    per_row = 2 * (2 * _vmem_row_bytes(F, x.dtype.itemsize) + _vmem_row_bytes(1, 4))
    tb = _pick_block_rows(B, per_row, stream_budget)
    grid = (pl.cdiv(B, tb),)

    cost = pl.CostEstimate(
        flops=int(B) * (8 * F + 2 * L_pad * F * len(tables)),
        transcendentals=int(B),
        bytes_accessed=int(2 * B * F * x.dtype.itemsize + B * 4
                           + sum(t.size for t in tables) * 4),
    )

    out = pl.pallas_call(
        _plain_kernel,
        out_shape=jax.ShapeDtypeStruct((B, F), x.dtype),
        grid_spec=pltpu.PrefetchScalarGridSpec(
            num_scalar_prefetch=0,
            grid=grid,
            in_specs=[pl.BlockSpec((tb, F), lambda i: (i, 0)),
                      pl.BlockSpec((tb, 1), lambda i: (i, 0)),
                      *[pl.BlockSpec((L_pad, F), lambda i: (0, 0)) for _ in tables]],
            out_specs=pl.BlockSpec((tb, F), lambda i: (i, 0)),
        ),
        compiler_params=pltpu.CompilerParams(
            dimension_semantics=("parallel",), vmem_limit_bytes=vmem_limit),
        cost_estimate=cost,
    )(x, idx, *tables)
    return out


def conditional_instance_norm1d(x, y, embed_weight, num_features, bias=True):
    """x: (B, F) float; y: (B,) int; embed_weight: (L, 2F) if bias else (L, F)."""
    B, F = x.shape
    assert F == num_features
    if bias:
        assert embed_weight.shape[1] == 2 * num_features
        gamma_w = embed_weight[:, :num_features]
        beta_w = embed_weight[:, num_features:]
    else:
        assert embed_weight.shape[1] == num_features
        gamma_w, beta_w = embed_weight, None

    if F < 128 and 128 % F == 0:
        return _packed_call(x, y, gamma_w, beta_w)
    return _plain_call(x, y, gamma_w, beta_w)


def _reference(x, y, embed_weight, num_features, bias=True):
    """Pure-JAX reference matching the PyTorch semantics (verification only)."""
    mean = jnp.mean(x, axis=-1, keepdims=True)
    var = jnp.mean((x - mean) ** 2, axis=-1, keepdims=True)
    h = (x - mean) / jnp.sqrt(var + EPS)
    emb = embed_weight[y]
    if bias:
        return emb[:, :num_features] * h + emb[:, num_features:]
    return emb * h


if __name__ == "__main__":
    key = jax.random.PRNGKey(0)
    kx, ky, kw, kx2, ky2, kw2, kx3, ky3, kw3 = jax.random.split(key, 9)

    # Case 1: motion_scorenet-style config (2-D (B, F) input) -> packed lane-dense path.
    B, F, L = 8, 32, 10
    x = jax.random.normal(kx, (B, F), dtype=jnp.float32)
    y = jax.random.randint(ky, (B,), 0, L, dtype=jnp.int32)
    # PyTorch init: embed.weight[:, :F].uniform_(), embed.weight[:, F:].zero_()
    gamma_w = jax.random.uniform(kw, (L, F), dtype=jnp.float32)
    embed_weight = jnp.concatenate([gamma_w, jnp.zeros((L, F), jnp.float32)], axis=-1)

    out = jax.block_until_ready(conditional_instance_norm1d(x, y, embed_weight, F, bias=True))
    ref = _reference(x, y, embed_weight, F, bias=True)
    assert out.shape == (B, F)
    assert jnp.allclose(out, ref, atol=1e-4, rtol=1e-4), float(jnp.max(jnp.abs(out - ref)))

    # Case 2: bias=False (embedding is (L, F); no beta array anywhere).
    out_nb = jax.block_until_ready(conditional_instance_norm1d(x, y, gamma_w, F, bias=False))
    ref_nb = _reference(x, y, gamma_w, F, bias=False)
    assert jnp.allclose(out_nb, ref_nb, atol=1e-4, rtol=1e-4)

    # Case 3: packed path with batch padding (B % (128 // F) != 0) and non-zero beta.
    B3, F3, L3 = 10, 16, 5
    x3 = jax.random.normal(kx3, (B3, F3), dtype=jnp.float32)
    y3 = jax.random.randint(ky3, (B3,), 0, L3, dtype=jnp.int32)
    w3 = jax.random.uniform(kw3, (L3, 2 * F3), dtype=jnp.float32)
    out3 = jax.block_until_ready(conditional_instance_norm1d(x3, y3, w3, F3, bias=True))
    ref3 = _reference(x3, y3, w3, F3, bias=True)
    assert jnp.allclose(out3, ref3, atol=1e-4, rtol=1e-4)

    # Case 4: already-lane-dense fallback (F % 128 == 0) with a partial last grid block.
    B2, F2, L2 = 20, 128, 6
    x2 = jax.random.normal(kx2, (B2, F2), dtype=jnp.float32)
    y2 = jax.random.randint(ky2, (B2,), 0, L2, dtype=jnp.int32)
    w2 = jax.random.uniform(kw2, (L2, 2 * F2), dtype=jnp.float32)
    out2 = jax.block_until_ready(conditional_instance_norm1d(x2, y2, w2, F2, bias=True))
    ref2 = _reference(x2, y2, w2, F2, bias=True)
    assert jnp.allclose(out2, ref2, atol=1e-4, rtol=1e-4)

    print("KERNEL_OK")
</pallas_src>

<mosaic_0001>
module attributes {stable_mosaic.version = 11 : i64} {
  func.func @_packed_kernel(%arg0: i32, %arg1: memref<2x128xf32, #tpu.memory_space<vmem>>, %arg2: memref<2x4xi32, #tpu.memory_space<vmem>>, %arg3: memref<128x128xf32, #tpu.memory_space<vmem>>, %arg4: memref<64x256xf32, #tpu.memory_space<vmem>>, %arg5: memref<2x128xf32, #tpu.memory_space<vmem>>) attributes {dimension_semantics = [#tpu.dimension_semantics<parallel>], iteration_bounds = array<i64: 1>, scalar_prefetch = 0 : i64, scratch_operands = 0 : i64, tpu.core_type = #tpu.core_type<tc>, window_params = [{transform_indices = @transform_0, window_bounds = array<i64: 2, 128>}, {transform_indices = @transform_1, window_bounds = array<i64: 2, 4>}, {pipeline_mode = #tpu.pipeline_mode<synchronous>, transform_indices = @transform_2, window_bounds = array<i64: 128, 128>}, {pipeline_mode = #tpu.pipeline_mode<synchronous>, transform_indices = @transform_3, window_bounds = array<i64: 64, 256>}, {transform_indices = @transform_4, window_bounds = array<i64: 2, 128>}]} {
    %c0 = arith.constant 0 : index
    %c0_0 = arith.constant 0 : index
    %0 = vector.load %arg1[%c0, %c0_0] : memref<2x128xf32, #tpu.memory_space<vmem>>, vector<2x128xf32>
    %c0_1 = arith.constant 0 : index
    %c0_2 = arith.constant 0 : index
    %1 = vector.load %arg3[%c0_1, %c0_2] : memref<128x128xf32, #tpu.memory_space<vmem>>, vector<128x128xf32>
    %cst = arith.constant dense<0.000000e+00> : vector<2x128xf32>
    %2 = tpu.matmul %0, %1, %cst {dimension_numbers = #tpu.dot_dimension_numbers<[1], [0], [0], [1], [0, 0, 1, 1], [], []>} : vector<2x128xf32>, vector<128x128xf32>, vector<2x128xf32> -> vector<2x128xf32>
    %3 = arith.subf %0, %2 : vector<2x128xf32>
    %4 = arith.mulf %3, %3 : vector<2x128xf32>
    %cst_3 = arith.constant dense<0.000000e+00> : vector<2x128xf32>
    %5 = tpu.matmul %4, %1, %cst_3 {dimension_numbers = #tpu.dot_dimension_numbers<[1], [0], [0], [1], [0, 0, 1, 1], [], []>} : vector<2x128xf32>, vector<128x128xf32>, vector<2x128xf32> -> vector<2x128xf32>
    %cst_4 = arith.constant 9.99999974E-6 : f32
    %6 = vector.broadcast %cst_4 : f32 to vector<2x128xf32>
    %7 = arith.addf %5, %6 : vector<2x128xf32>
    %8 = math.rsqrt %7 : vector<2x128xf32>
    %9 = arith.mulf %3, %8 : vector<2x128xf32>
    %c0_5 = arith.constant 0 : index
    %c0_6 = arith.constant 0 : index
    %10 = vector.load %arg2[%c0_5, %c0_6] : memref<2x4xi32, #tpu.memory_space<vmem>>, vector<2x4xi32>
    %11 = tpu.iota {dimensions = array<i32: 1>} : vector<2x64xi32>
    %12 = vector.extract_strided_slice %10 {offsets = [0, 0], sizes = [2, 1], strides = [1, 1]} : vector<2x4xi32> to vector<2x1xi32>
    %13 = vector.broadcast %12 : vector<2x1xi32> to vector<2x64xi32>
    %14 = arith.cmpi eq, %13, %11 : vector<2x64xi32>
    %15 = vector.extract_strided_slice %10 {offsets = [0, 1], sizes = [2, 1], strides = [1, 1]} : vector<2x4xi32> to vector<2x1xi32>
    %16 = vector.broadcast %15 : vector<2x1xi32> to vector<2x64xi32>
    %17 = arith.cmpi eq, %16, %11 : vector<2x64xi32>
    %18 = arith.ori %14, %17 : vector<2x64xi1>
    %19 = vector.extract_strided_slice %10 {offsets = [0, 2], sizes = [2, 1], strides = [1, 1]} : vector<2x4xi32> to vector<2x1xi32>
    %20 = vector.broadcast %19 : vector<2x1xi32> to vector<2x64xi32>
    %21 = arith.cmpi eq, %20, %11 : vector<2x64xi32>
    %22 = arith.ori %18, %21 : vector<2x64xi1>
    %23 = vector.extract_strided_slice %10 {offsets = [0, 3], sizes = [2, 1], strides = [1, 1]} : vector<2x4xi32> to vector<2x1xi32>
    %24 = vector.broadcast %23 : vector<2x1xi32> to vector<2x64xi32>
    %25 = arith.cmpi eq, %24, %11 : vector<2x64xi32>
    %26 = arith.ori %22, %25 : vector<2x64xi1>
    %27 = arith.extui %26 : vector<2x64xi1> to vector<2x64xi32>
    %28 = arith.sitofp %27 : vector<2x64xi32> to vector<2x64xf32>
    %c0_7 = arith.constant 0 : index
    %c0_8 = arith.constant 0 : index
    %29 = vector.load %arg4[%c0_7, %c0_8] : memref<64x256xf32, #tpu.memory_space<vmem>>, vector<64x256xf32>
    %cst_9 = arith.constant dense<0.000000e+00> : vector<2x256xf32>
    %30 = tpu.matmul %28, %29, %cst_9 {dimension_numbers = #tpu.dot_dimension_numbers<[1], [0], [0], [1], [0, 0, 1, 1], [], []>} : vector<2x64xf32>, vector<64x256xf32>, vector<2x256xf32> -> vector<2x256xf32>
    %31 = vector.extract_strided_slice %30 {offsets = [0, 0], sizes = [2, 128], strides = [1, 1]} : vector<2x256xf32> to vector<2x128xf32>
    %32 = arith.mulf %31, %9 : vector<2x128xf32>
    %33 = vector.extract_strided_slice %30 {offsets = [0, 128], sizes = [2, 128], strides = [1, 1]} : vector<2x256xf32> to vector<2x128xf32>
    %34 = arith.addf %32, %33 : vector<2x128xf32>
    %c0_10 = arith.constant 0 : index
    %c0_11 = arith.constant 0 : index
    %35 = vector.load %arg5[%c0_10, %c0_11] : memref<2x128xf32, #tpu.memory_space<vmem>>, vector<2x128xf32>
    tpu.vector_store %arg5[%c0_10, %c0_11], %34 {strides = array<i32>} : memref<2x128xf32, #tpu.memory_space<vmem>>, vector<2x128xf32>,
    return
  }
  func.func @transform_0(%arg0: i32) -> (i32, i32) {
    %c0_i32 = arith.constant 0 : i32
    %c0_i32_0 = arith.constant 0 : i32
    return %arg0, %c0_i32 : i32, i32
  }
  func.func @transform_1(%arg0: i32) -> (i32, i32) {
    %c0_i32 = arith.constant 0 : i32
    %c0_i32_0 = arith.constant 0 : i32
    return %arg0, %c0_i32 : i32, i32
  }
  func.func @transform_2(%arg0: i32) -> (i32, i32) {
    %c0_i32 = arith.constant 0 : i32
    %c0_i32_0 = arith.constant 0 : i32
    %c0_i32_1 = arith.constant 0 : i32
    return %c0_i32, %c0_i32_0 : i32, i32
  }
  func.func @transform_3(%arg0: i32) -> (i32, i32) {
    %c0_i32 = arith.constant 0 : i32
    %c0_i32_0 = arith.constant 0 : i32
    %c0_i32_1 = arith.constant 0 : i32
    return %c0_i32, %c0_i32_0 : i32, i32
  }
  func.func @transform_4(%arg0: i32) -> (i32, i32) {
    %c0_i32 = arith.constant 0 : i32
    %c0_i32_0 = arith.constant 0 : i32
    return %arg0, %c0_i32 : i32, i32
  }
}

</mosaic_0001>

<bundles_post_ra>
// kernel: tpu_custom_call.1
= control target key start
LH: loop header
LB: loop body
LE: loop exit
PB: predicated region body
PF: predicated region fallthrough
CT: control target
= control target key end

     0   :  { %9 = vsyncpa [#allocation3], 0  ;;  %s459_s0 = inlined_call_operand.hbm [shape: f32[2,128], index: 0, kind: input, shape index: {}]   ;;  %s460_s1 = inlined_call_operand.hbm [shape: s32[2,4], index: 1, kind: input, shape index: {}]   ;;  %s461_s2 = inlined_call_operand.hbm [shape: f32[128,128], index: 2, kind: input, shape index: {}]   ;;  %s462_s3 = inlined_call_operand.hbm [shape: f32[64,256], index: 3, kind: input, shape index: {}]   ;;  %s463_s4 = inlined_call_operand.hbm [shape: f32[2,128], index: 4, kind: output, shape index: {}]  }
   0x1   :  { %10 = vsyncpa [#allocation6], 0 }
   0x2   :  { %11 = vsyncpa [#allocation9], 0  ;;  %s29_s17 = sshll.u32 %s460_s1, 4  ;;  %s30_s17 = int_to_ptr.hbm [resolvable:$true] %s29_s17 }
   0x3   :  { %12 = vsyncpa [#allocation4], 0  ;;  %s405_s18 = smov [#allocation5]   ;;  %s18_s22 = sshll.u32 %s459_s0, 4  ;;  %s19_s22 = int_to_ptr.hbm [resolvable:$true] %s18_s22 }
   0x4   :  { %s31_s19 = sshll.u32 %s405_s18, 4  ;;  %s406_s23 = smov [#allocation2]   ;;  %s32_s19 = int_to_ptr.vmem [resolvable:$true] %s31_s19 }
   0x5   :  { %34 = dma.hbm_to_vmem [thread:$0]  %s30_s17, 32, %s32_s19, [#allocation6]  }
   0x6   :  { %s20_s24 = sshll.u32 %s406_s23, 4  ;;  %s39_s27 = sshll.u32 %s461_s2, 4  ;;  %s21_s24 = int_to_ptr.vmem [resolvable:$true] %s20_s24  ;;  %s40_s27 = int_to_ptr.hbm [resolvable:$true] %s39_s27 }
   0x7   :  { %23 = dma.hbm_to_vmem [thread:$0]  %s19_s22, 32, %s21_s24, [#allocation3]  }
   0x8   :  { %s407_s1 = smov [#allocation7]   ;;  %s52_s5 = sshll.u32 %s462_s3, 4  ;;  %s53_s5 = int_to_ptr.hbm [resolvable:$true] %s52_s5 }
   0x9   :  { %s41_s28 = sshll.u32 %s407_s1, 4  ;;  %s408_s6 = smov 128   ;;  %s42_s28 = int_to_ptr.vmem [resolvable:$true] %s41_s28 }
   0xa   :  { %s409_s0 = smov 8   ;;  %s410_s7 = smov [#allocation8]  }
   0xb   :  { %47 = dma.hbm_to_vmem [thread:$0]  %s40_s27, 2048, %s42_s28, [#allocation6], %s408_s6, %s408_s6, %s409_s0  }
   0xc   :  { %s54_s8 = sshll.u32 %s410_s7, 4  ;;  %s411_s9 = smov 256   ;;  %s55_s8 = int_to_ptr.vmem [resolvable:$true] %s54_s8 }
   0xd   :  { %s412_s10 = smov 16  }
   0xe   :  { %60 = dma.hbm_to_vmem [thread:$0]  %s53_s5, 2048, %s55_s8, [#allocation9], %s411_s9, %s411_s9, %s412_s10  }
   0xf   :  { %397 = dma.done.wait [#allocation3], 32  }
  0x10   :  { %398 = vsyncadd [#allocation3], 4294967264 }
  0x11   :  { %399 = dma.done.wait [#allocation6], 2080  }
  0x12   :  { %400 = vsyncadd [#allocation6], 4294965216 }
  0x13   :  { %401 = dma.done.wait [#allocation9], 2048  }
  0x14   :  { %402 = vsyncadd [#allocation9], 4294965248  ;;  %v93_v0 = vld [vmem:[#allocation7 + $0x78] sm:$0xff]  ;;  %v92_v1 = vld [vmem:[#allocation7 + $0x70] sm:$0xff]  ;;  %v413_v2 = vmov 0   ;;  %v414_v4 = vmov 2   ;;  %v148_v28 = vlaneseq }
  0x15   :  { %94 = vmatpush.msra.mxu0 %v93_v0  ;;  %270 = vset.pattern.permute.xlu0 %v413_v2  ;;  %v91_v3 = vld [vmem:[#allocation7 + $0x68] sm:$0xff]  ;;  %v90_v5 = vld [vmem:[#allocation7 + $0x60] sm:$0xff]  ;;  %v147_v6 = vld [vmem:[#allocation5] sm:$0x3]  ;;  %v415_v14 = vmov 1   ;;  %v416_v15 = vmov 3  }
  0x16   :  { %272 = vset.pattern.permute.xlu1 %v414_v4  ;;  %116 = vmatpush.msra.mxu1 %v93_v0  ;;  %v89_v7 = vld [vmem:[#allocation7 + $0x58] sm:$0xff]  ;;  %v185_v8 = vld [vmem:[#allocation8 + $0x70] sm:$0xff]  ;;  %v87_v11 = vld [vmem:[#allocation7 + $0x48] sm:$0xff]  ;;  %v149_v29 = vand.u32 127, %v148_v28  ;;  %vm187_vm7 = vcmask 523264   ;;  %v417_v44 = vmov 0.0  }
  0x17   :  { %95 = vmatpush.msra.mxu0 %v92_v1  ;;  %151 = vperm.xlu0 %270, %v147_v6   ;;  %v186_v9 = vld [vmem:[#allocation8 + $0x78] sm:$0xff]  ;;  %v88_v10 = vld [vmem:[#allocation7 + $0x50] sm:$0xff]  ;;  %v86_v12 = vld [vmem:[#allocation7 + $0x40] sm:$0xff]  ;;  %s418_s2 = smov [#allocation10]   ;;  %s241_s13 = sshll.u32 %s463_s4, 4  ;;  %s242_s13 = int_to_ptr.hbm [resolvable:$true] %s241_s13 }
  0x18   :  { %117 = vmatpush.msra.mxu1 %v92_v1  ;;  %160 = vperm.xlu1 %272, %v147_v6   ;;  %v85_v13 = vld [vmem:[#allocation7 + $0x38] sm:$0xff]  ;;  %v84_v16 = vld [vmem:[#allocation7 + $0x30] sm:$0xff]  ;;  %v83_v17 = vld [vmem:[#allocation7 + $0x28] sm:$0xff]  ;;  %s239_s3 = sshll.u32 %s418_s2, 4  ;;  %s240_s3 = int_to_ptr.vmem [resolvable:$true] %s239_s3 }
  0x19   :  { %96 = vmatpush.msra.mxu0 %v91_v3  ;;  %199 = vmatpush.msra.mxu2 %v185_v8  ;;  %v82_v18 = vld [vmem:[#allocation7 + $0x20] sm:$0xff]  ;;  %v81_v19 = vld [vmem:[#allocation7 + $0x18] sm:$0xff]  ;;  %v80_v20 = vld [vmem:[#allocation7 + $0x10] sm:$0xff] }
  0x1a   :  { %118 = vmatpush.msra.mxu1 %v91_v3  ;;  %219 = vmatpush.msra.mxu3 %v186_v9  ;;  %v79_v21 = vld [vmem:[#allocation7 + $0x8] sm:$0xff]  ;;  %v78_v22 = vld [vmem:[#allocation7] sm:$0xff]  ;;  %v77_v23 = vld [vmem:[#allocation2] sm:$0x3] }
  0x1b   :  { %97 = vmatpush.msra.mxu0 %v90_v5  ;;  %v183_v24 = vld [vmem:[#allocation8 + $0x60] sm:$0xff]  ;;  %v184_v25 = vld [vmem:[#allocation8 + $0x68] sm:$0xff]  ;;  %v181_v30 = vld [vmem:[#allocation8 + $0x50] sm:$0xff] }
  0x1c   :  { %119 = vmatpush.msra.mxu1 %v90_v5  ;;  %200 = vmatpush.msra.mxu2 %v183_v24  ;;  %v182_v31 = vld [vmem:[#allocation8 + $0x58] sm:$0xff]  ;;  %v179_v32 = vld [vmem:[#allocation8 + $0x40] sm:$0xff]  ;;  %v180_v33 = vld [vmem:[#allocation8 + $0x48] sm:$0xff] }
  0x1d   :  { %98 = vmatpush.msra.mxu0 %v89_v7  ;;  %220 = vmatpush.msra.mxu3 %v184_v25  ;;  %v177_v34 = vld [vmem:[#allocation8 + $0x30] sm:$0xff]  ;;  %v178_v35 = vld [vmem:[#allocation8 + $0x38] sm:$0xff]  ;;  %v175_v37 = vld [vmem:[#allocation8 + $0x20] sm:$0xff] }
  0x1e   :  { %120 = vmatpush.msra.mxu1 %v89_v7  ;;  %201 = vmatpush.msra.mxu2 %v181_v30  ;;  %v176_v38 = vld [vmem:[#allocation8 + $0x28] sm:$0xff]  ;;  %v173_v40 = vld [vmem:[#allocation8 + $0x10] sm:$0xff]  ;;  %v174_v41 = vld [vmem:[#allocation8 + $0x18] sm:$0xff] }
  0x1f   :  { %99 = vmatpush.msra.mxu0 %v88_v10  ;;  %271 = vset.pattern.permute.xlu0 %v415_v14  ;;  %v171_v42 = vld [vmem:[#allocation8] sm:$0xff]  ;;  %v172_v43 = vld [vmem:[#allocation8 + $0x8] sm:$0xff] }
  0x20   :  { %121 = vmatpush.msra.mxu1 %v88_v10  ;;  %273 = vset.pattern.permute.xlu1 %v416_v15 }
  0x21   :  { %100 = vmatpush.msra.mxu0 %v87_v11  ;;  %155 = vperm.xlu0 %271, %v147_v6  }
  0x22   :  { %165 = vperm.xlu1 %273, %v147_v6   ;;  %122 = vmatpush.msra.mxu1 %v87_v11 }
  0x23   :  { %101 = vmatpush.msra.mxu0 %v86_v12  ;;  %221 = vmatpush.msra.mxu3 %v182_v31 }
  0x24   :  { %123 = vmatpush.msra.mxu1 %v86_v12  ;;  %202 = vmatpush.msra.mxu2 %v179_v32 }
  0x25   :  { %102 = vmatpush.msra.mxu0 %v85_v13  ;;  %222 = vmatpush.msra.mxu3 %v180_v33 }
  0x26   :  { %124 = vmatpush.msra.mxu1 %v85_v13  ;;  %203 = vmatpush.msra.mxu2 %v177_v34 }
  0x27   :  { %103 = vmatpush.msra.mxu0 %v84_v16  ;;  %223 = vmatpush.msra.mxu3 %v178_v35 }
  0x28   :  { %125 = vmatpush.msra.mxu1 %v84_v16  ;;  %204 = vmatpush.msra.mxu2 %v175_v37 }
  0x29   :  { %104 = vmatpush.msra.mxu0 %v83_v17  ;;  %274 = vset.pattern.permute.xlu0 %v416_v15 }
  0x2a   :  { %126 = vmatpush.msra.mxu1 %v83_v17  ;;  %224 = vmatpush.msra.mxu3 %v176_v38 }
  0x2b   :  { %105 = vmatpush.msra.mxu0 %v82_v18  ;;  %205 = vmatpush.msra.mxu2 %v173_v40 }
  0x2c   :  { %127 = vmatpush.msra.mxu1 %v82_v18  ;;  %225 = vmatpush.msra.mxu3 %v174_v41 }
  0x2d   :  { %106 = vmatpush.msra.mxu0 %v81_v19  ;;  %206 = vmatpush.msra.mxu2 %v171_v42 }
  0x2e   :  { %128 = vmatpush.msra.mxu1 %v81_v19  ;;  %226 = vmatpush.msra.mxu3 %v172_v43 }
  0x2f   :  { %107 = vmatpush.msra.mxu0 %v80_v20 }
  0x30   :  { %129 = vmatpush.msra.mxu1 %v80_v20 }
  0x31   :  { %108 = vmatpush.msra.mxu0 %v79_v21 }
  0x32   :  { %130 = vmatpush.msra.mxu1 %v79_v21 }
  0x33   :  { %109 = vmatpush.msra.mxu0 %v78_v22 }
  0x34   :  { %110 = vmatmul.f32.vlgmr.msra.gmra.mxu0 %v77_v23  ;;  %131 = vmatpush.msra.mxu1 %v78_v22 }
  0x89   :  { %v152_v26 = vpop.permute.xlu0 %151 }
  0x8a   :  { %v161_v27 = vpop.permute.xlu1 %160  ;;  %vm153_vm0 = vcmp.eq.s32.totalorder %v152_v26, %v149_v29 }
  0x8b   :  { %vm162_vm1 = vcmp.eq.s32.totalorder %v161_v27, %v149_v29 }
  0x93   :  { %v156_v36 = vpop.permute.xlu0 %155 }
  0x94   :  { %v166_v39 = vpop.permute.xlu1 %165  ;;  %vm157_vm2 = vcmp.eq.s32.totalorder %v156_v36, %v149_v29 }
  0x95   :  { %vm167_vm3 = vcmp.eq.s32.totalorder %v166_v39, %v149_v29  ;;  %vm158_vm4 = vmor %vm153_vm0, %vm157_vm2 }
  0x96   :  { %vm163_vm5 = vmor %vm158_vm4, %vm162_vm1 }
  0x97   :  { %vm168_vm6 = vmor %vm163_vm5, %vm167_vm3 }
  0x98   :  { %v253_v45 = vsel %vm168_vm6, 1.0, %v417_v44 }
  0x99   :  { %254 = vmatmul.msk.f32.vlgmr.msra.gmra.mxu2 %vm187_vm7, %v253_v45  ;;  %255 = vmatmul.msk.f32.vlgmr.msra.gmra.mxu3 %vm187_vm7, %v253_v45 }
  0xb1   :  { %v111_v46 = vpop.f32.mrf.mxu0 }
  0xb2   :  { %v114_v47 = vsub.f32 %v77_v23, %v111_v46 }
  0xb4   :  { %v115_v48 = vmul.f32 %v114_v47, %v114_v47 }
  0xb6   :  { %132 = vmatmul.f32.vlgmr.msra.gmra.mxu1 %v115_v48 }
 0x11c   :  { %v208_v59 = vpop.f32.mrf.mxu2  ;;  %v228_v61 = vpop.f32.mrf.mxu3 }
 0x133   :  { %v133_v49 = vpop.f32.mrf.mxu1 }
 0x134   :  { %v134_v50 = vadd.f32 1e-05, %v133_v49 }
 0x136   :  { %275 = vrsqrt.f32 %v134_v50  ;;  %vm142_vm9 = vweird.f32 %v134_v50 }
 0x13c   :  { %v276_v51 = vpop.eup %275 }
 0x13d   :  { %v137_v52 = vmul.f32 %v276_v51, %v134_v50  ;;  %vm143_vm8 = vweird.f32 %v276_v51 }
 0x13e   :  { %vm144_vm10 = vmor %vm142_vm9, %vm143_vm8 }
 0x13f   :  { %v138_v53 = vmul.f32 %v276_v51, %v137_v52 }
 0x141   :  { %v139_v54 = vmul.f32 0.5, %v138_v53 }
 0x143   :  { %v140_v55 = vsub.f32 1.5, %v139_v54 }
 0x145   :  { %v141_v56 = vmul.f32 %v276_v51, %v140_v55 }
 0x147   :  { %v145_v57 = vsel %vm144_vm10, %v276_v51, %v141_v56 }
 0x148   :  { %v146_v58 = vmul.f32 %v145_v57, %v114_v47 }
 0x14a   :  { %v231_v60 = vmul.f32 %v208_v59, %v146_v58 }
 0x14c   :  { %v232_v62 = vadd.f32 %v231_v60, %v228_v61 }
 0x14e   :  { %233 = vst [vmem:[#allocation10] sm:$0x3] %v232_v62 }
 0x14f   :  { %244 = dma.vmem_to_hbm [thread:$0]  %s240_s3, 32, %s242_s13, [#allocation4]  }
 0x150   :  { %403 = dma.done.wait [#allocation4], 32  }
 0x151   :  { %404 = vsyncadd [#allocation4], 4294967264 }
 0x152   :  { %249 = vsyncpa [#allocation3], 1 }
 0x153   :  { %250 = vsyncpa [#allocation6], 1 }
 0x154   :  { %251 = vsyncpa [#allocation9], 1 }
 0x155   :  { %252 = vsyncpa [#allocation4], 1 }

</bundles_post_ra>
